<compile_context>
chip_gen: v5e
topology: v5e:2x2
jax: 0.10.0
libtpu: 0.0.40
codegen_flags: <defaults>
</compile_context>

<pallas_src>
import math
import numpy as np
import jax
import jax.numpy as jnp
from jax.experimental import pallas as pl
from jax.experimental.pallas import tpu as pltpu


def _make_vnet_kernel(S: int, H: int, W: int, tau: float, lam_s: float):
    # Hoisted scalar algebra (compile-time constants).
    c = 1.0 / (1.0 + lam_s)        # 1 / (1 + lambda/S)
    a = tau * c                    # tau / (1 + lambda/S)
    zc = lam_s * c                 # (lambda/S) / (1 + lambda/S)
    cm4a = c - 4.0 * a             # fold the 4*x stencil term into the x coefficient

    def kernel(x_ref, z_ref, out_ref):
        # x_ref, z_ref : (SH, LW) f32  -- Gh x Gw images packed into one slab
        # out_ref      : (S, SH, LW) f32
        x = x_ref[...]
        z_term = zc * z_ref[...]
        SH, LW = x.shape

        # Per-image boundary masks: narrow iotas/compares, one hoisted broadcast.
        col = jax.lax.broadcasted_iota(jnp.int32, (1, LW), 1) % W
        row = jax.lax.broadcasted_iota(jnp.int32, (SH, 1), 0) % H
        left = jnp.broadcast_to(col == 0, (SH, LW))
        right = jnp.broadcast_to(col == (W - 1), (SH, LW))
        top = jnp.broadcast_to(row == 0, (SH, LW))
        bot = jnp.broadcast_to(row == (H - 1), (SH, LW))

        for s in range(S):
            # Clamped (Neumann) neighbors via circular rolls + edge masks.
            x_l = jnp.where(left, x, pltpu.roll(x, 1, 1))        # x[:, j-1]
            x_r = jnp.where(right, x, pltpu.roll(x, LW - 1, 1))  # x[:, j+1]
            x_u = jnp.where(top, x, pltpu.roll(x, 1, 0))         # x[i-1, :]
            x_d = jnp.where(bot, x, pltpu.roll(x, SH - 1, 0))    # x[i+1, :]
            nsum = (x_l + x_r) + (x_u + x_d)
            # prox_L2(x - tau*(4x - nsum), z, lam_s) = (c-4a)*x + a*nsum + zc*z
            x = cm4a * x + a * nsum + z_term
            out_ref[s] = x

    return kernel


def _choose_packing(NC: int, H: int, W: int,
                    target_lanes: int = 1024,
                    target_slab_elems: int = 128 * 1024):
    """Pick (Gw, Gh): images per slab along lanes / sublanes."""
    # Lane packing: make LW = Gw*W a multiple of 128 when cheaply possible.
    if W % 128 == 0:
        Gw = 1
    else:
        g0 = 128 // math.gcd(W, 128)          # smallest Gw with Gw*W % 128 == 0
        if g0 * W <= 2048:
            reps = max(1, min(target_lanes // (g0 * W), max(1, NC // g0)))
            Gw = g0 * reps
        else:
            Gw = max(1, min(target_lanes // W, max(1, NC)))
    Gw = max(1, Gw)
    LW = Gw * W
    # Sublane packing: grow the slab toward ~target_slab_elems, but keep the
    # grid >= 2 steps when the data allows (megacore on v7x).
    n_lane_groups = -(-NC // Gw)
    gh_cap_data = max(1, n_lane_groups // 2) if n_lane_groups >= 2 else 1
    gh_cap_vmem = max(1, target_slab_elems // max(1, H * LW))
    Gh = max(1, min(gh_cap_data, gh_cap_vmem))
    return Gw, Gh


def vnet_forward(x, z, T=1.0, lmbda=0.1, S=4):
    """Pallas implementation of VNet.forward(x, z) with get_grad_R=False."""
    N, C, H, W = x.shape
    NC = N * C
    xf = x.reshape(NC, H, W).astype(jnp.float32)
    zf = z.reshape(NC, H, W).astype(jnp.float32)

    Gw, Gh = _choose_packing(NC, H, W)
    per_slab = Gh * Gw
    G = -(-NC // per_slab)
    NC_pad = G * per_slab
    if NC_pad != NC:
        pad = NC_pad - NC
        zeros = jnp.zeros((pad, H, W), jnp.float32)
        xf = jnp.concatenate([xf, zeros], axis=0)
        zf = jnp.concatenate([zf, zeros], axis=0)
    SH = Gh * H
    LW = Gw * W

    def pack(arr):
        # (NC_pad, H, W) -> (G, Gh*H, Gw*W); free reshape when Gw == 1.
        return (arr.reshape(G, Gh, Gw, H, W)
                   .transpose(0, 1, 3, 2, 4)
                   .reshape(G, SH, LW))

    xp = pack(xf)
    zp = pack(zf)

    tau = float(T) / S
    lam_s = float(lmbda) / S

    elems = G * SH * LW
    cost = pl.CostEstimate(flops=13 * S * elems,
                           transcendentals=0,
                           bytes_accessed=(2 + S) * 4 * elems)

    out = pl.pallas_call(
        _make_vnet_kernel(S, H, W, tau, lam_s),
        out_shape=jax.ShapeDtypeStruct((S, G, SH, LW), jnp.float32),
        grid=(G,),
        in_specs=[
            pl.BlockSpec((None, SH, LW), lambda i: (i, 0, 0)),   # x slab
            pl.BlockSpec((None, SH, LW), lambda i: (i, 0, 0)),   # z slab
        ],
        out_specs=pl.BlockSpec((S, None, SH, LW), lambda i: (0, i, 0, 0)),
        compiler_params=pltpu.CompilerParams(
            dimension_semantics=("parallel",),
            vmem_limit_bytes=32 * 1024 * 1024),
        cost_estimate=cost,
    )(xp, zp)

    # Unpack (S, G, Gh*H, Gw*W) -> (S, N, C, H, W); free reshape when Gw == 1.
    out = (out.reshape(S, G, Gh, H, Gw, W)
              .transpose(0, 1, 2, 4, 3, 5)
              .reshape(S, NC_pad, H, W)[:, :NC]
              .reshape(S, N, C, H, W))

    # x_all[0] is the untouched input — produced here instead of in the kernel.
    x0 = x.reshape(1, N, C, H, W).astype(jnp.float32)
    return jnp.concatenate([x0, out], axis=0)


# ----------------------- pure-JAX reference (dense Laplacian) -----------------------

def _tv_laplacian(n: int) -> np.ndarray:
    """D^T D for forward differences with Neumann-style boundary (last diff = 0)."""
    D = np.zeros((n, n), dtype=np.float32)
    for j in range(n - 1):
        D[j, j] = -1.0
        D[j, j + 1] = 1.0
    return (D.T @ D).astype(np.float32)


def vnet_reference(x, z, T=1.0, lmbda=0.1, S=4):
    """Pure-JAX reference matching the PyTorch forward semantics."""
    N, C, H, W = x.shape
    Lh = jnp.asarray(_tv_laplacian(H))
    Lw = jnp.asarray(_tv_laplacian(W))
    tau = T / S
    lam_s = lmbda / S
    cur = x.astype(jnp.float32)
    zf = z.astype(jnp.float32)
    xs = [cur]
    for _ in range(S):
        grad_R = (jnp.einsum('hm,ncmw->nchw', Lh, cur)
                  + jnp.einsum('nchm,mw->nchw', cur, Lw))
        cur = ((cur - tau * grad_R) + lam_s * zf) / (1.0 + lam_s)
        xs.append(cur)
    return jnp.stack(xs, axis=0)


if __name__ == "__main__":
    key = jax.random.PRNGKey(0)
    k1, k2 = jax.random.split(key)
    N, C, H, W = 2, 4, 16, 16
    x = jax.random.normal(k1, (N, C, H, W), dtype=jnp.float32)
    z = x + 0.1 * jax.random.normal(k2, (N, C, H, W), dtype=jnp.float32)

    x_all = vnet_forward(x, z, T=1.0, lmbda=0.1, S=4)
    x_all = jax.block_until_ready(x_all)

    x_all_ref = vnet_reference(x, z, T=1.0, lmbda=0.1, S=4)
    np.testing.assert_allclose(np.asarray(x_all), np.asarray(x_all_ref),
                               rtol=1e-4, atol=1e-5)
    print("KERNEL_OK")
</pallas_src>

<mosaic_0001>
module attributes {stable_mosaic.version = 11 : i64} {
  func.func @kernel(%arg0: i32, %arg1: memref<1x16x128xf32, #tpu.memory_space<vmem>>, %arg2: memref<1x16x128xf32, #tpu.memory_space<vmem>>, %arg3: memref<4x1x16x128xf32, #tpu.memory_space<vmem>>) attributes {dimension_semantics = [#tpu.dimension_semantics<parallel>], iteration_bounds = array<i64: 1>, scalar_prefetch = 0 : i64, scratch_operands = 0 : i64, tpu.core_type = #tpu.core_type<tc>, window_params = [{transform_indices = @transform_0, window_bounds = array<i64: 1, 16, 128>}, {transform_indices = @transform_1, window_bounds = array<i64: 1, 16, 128>}, {transform_indices = @transform_2, window_bounds = array<i64: 4, 1, 16, 128>}]} {
    %c0 = arith.constant 0 : index
    %c0_0 = arith.constant 0 : index
    %c0_1 = arith.constant 0 : index
    %0 = vector.load %arg1[%c0, %c0_0, %c0_1] : memref<1x16x128xf32, #tpu.memory_space<vmem>>, vector<1x16x128xf32>
    %1 = vector.shape_cast %0 : vector<1x16x128xf32> to vector<16x128xf32>
    %c0_2 = arith.constant 0 : index
    %c0_3 = arith.constant 0 : index
    %c0_4 = arith.constant 0 : index
    %2 = vector.load %arg2[%c0_2, %c0_3, %c0_4] : memref<1x16x128xf32, #tpu.memory_space<vmem>>, vector<1x16x128xf32>
    %3 = vector.shape_cast %2 : vector<1x16x128xf32> to vector<16x128xf32>
    %cst = arith.constant 0.024390243 : f32
    %4 = vector.broadcast %cst : f32 to vector<16x128xf32>
    %5 = arith.mulf %4, %3 : vector<16x128xf32>
    %6 = tpu.iota {dimensions = array<i32: 1>} : vector<1x128xi32>
    %c16_i32 = arith.constant 16 : i32
    %c0_i32 = arith.constant 0 : i32
    %7 = arith.cmpi eq, %c16_i32, %c0_i32 : i32
    %c1_i32 = arith.constant 1 : i32
    %8 = arith.select %7, %c1_i32, %c16_i32 : i32
    %9 = vector.broadcast %8 : i32 to vector<1x128xi32>
    %10 = arith.remsi %6, %9 : vector<1x128xi32>
    %c0_i32_5 = arith.constant 0 : i32
    %11 = vector.broadcast %c0_i32_5 : i32 to vector<1x128xi32>
    %12 = arith.cmpi ne, %10, %11 : vector<1x128xi32>
    %c0_i32_6 = arith.constant 0 : i32
    %13 = vector.broadcast %c0_i32_6 : i32 to vector<1x128xi32>
    %14 = arith.cmpi slt, %10, %13 : vector<1x128xi32>
    %c0_i32_7 = arith.constant 0 : i32
    %15 = arith.cmpi slt, %8, %c0_i32_7 : i32
    %16 = vector.broadcast %15 : i1 to vector<1x128xi1>
    %17 = vector.broadcast %16 : vector<1x128xi1> to vector<1x128xi1>
    %18 = arith.xori %14, %17 : vector<1x128xi1>
    %19 = arith.andi %18, %12 : vector<1x128xi1>
    %20 = vector.broadcast %8 : i32 to vector<1x128xi32>
    %21 = arith.addi %10, %20 : vector<1x128xi32>
    %22 = arith.select %19, %21, %10 : vector<1x128xi1>, vector<1x128xi32>
    %23 = tpu.iota {dimensions = array<i32: 0>} : vector<16x1xi32>
    %c16_i32_8 = arith.constant 16 : i32
    %c0_i32_9 = arith.constant 0 : i32
    %24 = arith.cmpi eq, %c16_i32_8, %c0_i32_9 : i32
    %c1_i32_10 = arith.constant 1 : i32
    %25 = arith.select %24, %c1_i32_10, %c16_i32_8 : i32
    %26 = vector.broadcast %25 : i32 to vector<16x1xi32>
    %27 = arith.remsi %23, %26 : vector<16x1xi32>
    %c0_i32_11 = arith.constant 0 : i32
    %28 = vector.broadcast %c0_i32_11 : i32 to vector<16x1xi32>
    %29 = arith.cmpi ne, %27, %28 : vector<16x1xi32>
    %c0_i32_12 = arith.constant 0 : i32
    %30 = vector.broadcast %c0_i32_12 : i32 to vector<16x1xi32>
    %31 = arith.cmpi slt, %27, %30 : vector<16x1xi32>
    %c0_i32_13 = arith.constant 0 : i32
    %32 = arith.cmpi slt, %25, %c0_i32_13 : i32
    %33 = vector.broadcast %32 : i1 to vector<16x1xi1>
    %34 = vector.broadcast %33 : vector<16x1xi1> to vector<16x1xi1>
    %35 = arith.xori %31, %34 : vector<16x1xi1>
    %36 = arith.andi %35, %29 : vector<16x1xi1>
    %37 = vector.broadcast %25 : i32 to vector<16x1xi32>
    %38 = arith.addi %27, %37 : vector<16x1xi32>
    %39 = arith.select %36, %38, %27 : vector<16x1xi1>, vector<16x1xi32>
    %c0_i32_14 = arith.constant 0 : i32
    %40 = vector.broadcast %c0_i32_14 : i32 to vector<1x128xi32>
    %41 = arith.cmpi eq, %22, %40 : vector<1x128xi32>
    %42 = vector.shape_cast %41 : vector<1x128xi1> to vector<1x128xi1>
    %43 = vector.broadcast %42 : vector<1x128xi1> to vector<16x128xi1>
    %c15_i32 = arith.constant 15 : i32
    %44 = vector.broadcast %c15_i32 : i32 to vector<1x128xi32>
    %45 = arith.cmpi eq, %22, %44 : vector<1x128xi32>
    %46 = vector.shape_cast %45 : vector<1x128xi1> to vector<1x128xi1>
    %47 = vector.broadcast %46 : vector<1x128xi1> to vector<16x128xi1>
    %c0_i32_15 = arith.constant 0 : i32
    %48 = vector.broadcast %c0_i32_15 : i32 to vector<16x1xi32>
    %49 = arith.cmpi eq, %39, %48 : vector<16x1xi32>
    %50 = vector.shape_cast %49 : vector<16x1xi1> to vector<16x1xi1>
    %51 = vector.broadcast %50 : vector<16x1xi1> to vector<16x128xi1>
    %c15_i32_16 = arith.constant 15 : i32
    %52 = vector.broadcast %c15_i32_16 : i32 to vector<16x1xi32>
    %53 = arith.cmpi eq, %39, %52 : vector<16x1xi32>
    %54 = vector.shape_cast %53 : vector<16x1xi1> to vector<16x1xi1>
    %55 = vector.broadcast %54 : vector<16x1xi1> to vector<16x128xi1>
    %c1_i32_17 = arith.constant 1 : i32
    %56 = tpu.dynamic_rotate %1 by %c1_i32_17 dim 1 : vector<16x128xf32>, i32 -> vector<16x128xf32>
    %57 = arith.select %43, %1, %56 : vector<16x128xi1>, vector<16x128xf32>
    %c127_i32 = arith.constant 127 : i32
    %58 = tpu.dynamic_rotate %1 by %c127_i32 dim 1 : vector<16x128xf32>, i32 -> vector<16x128xf32>
    %59 = arith.select %47, %1, %58 : vector<16x128xi1>, vector<16x128xf32>
    %c1_i32_18 = arith.constant 1 : i32
    %60 = tpu.dynamic_rotate %1 by %c1_i32_18 dim 0 : vector<16x128xf32>, i32 -> vector<16x128xf32>
    %61 = arith.select %51, %1, %60 : vector<16x128xi1>, vector<16x128xf32>
    %c15_i32_19 = arith.constant 15 : i32
    %62 = tpu.dynamic_rotate %1 by %c15_i32_19 dim 0 : vector<16x128xf32>, i32 -> vector<16x128xf32>
    %63 = arith.select %55, %1, %62 : vector<16x128xi1>, vector<16x128xf32>
    %64 = arith.addf %57, %59 : vector<16x128xf32>
    %65 = arith.addf %61, %63 : vector<16x128xf32>
    %66 = arith.addf %64, %65 : vector<16x128xf32>
    %cst_20 = arith.constant 0.000000e+00 : f32
    %67 = vector.broadcast %cst_20 : f32 to vector<16x128xf32>
    %68 = arith.mulf %67, %1 : vector<16x128xf32>
    %cst_21 = arith.constant 0.243902445 : f32
    %69 = vector.broadcast %cst_21 : f32 to vector<16x128xf32>
    %70 = arith.mulf %69, %66 : vector<16x128xf32>
    %71 = arith.addf %68, %70 : vector<16x128xf32>
    %72 = arith.addf %71, %5 : vector<16x128xf32>
    %c0_22 = arith.constant 0 : index
    %c0_23 = arith.constant 0 : index
    %c0_24 = arith.constant 0 : index
    %c0_25 = arith.constant 0 : index
    %73 = vector.load %arg3[%c0_22, %c0_23, %c0_24, %c0_25] : memref<4x1x16x128xf32, #tpu.memory_space<vmem>>, vector<1x1x16x128xf32>
    %74 = vector.shape_cast %73 : vector<1x1x16x128xf32> to vector<16x128xf32>
    %75 = vector.shape_cast %72 : vector<16x128xf32> to vector<1x1x16x128xf32>
    tpu.vector_store %arg3[%c0_22, %c0_23, %c0_24, %c0_25], %75 {strides = array<i32>} : memref<4x1x16x128xf32, #tpu.memory_space<vmem>>, vector<1x1x16x128xf32>,
    %c1_i32_26 = arith.constant 1 : i32
    %76 = tpu.dynamic_rotate %72 by %c1_i32_26 dim 1 : vector<16x128xf32>, i32 -> vector<16x128xf32>
    %77 = arith.select %43, %72, %76 : vector<16x128xi1>, vector<16x128xf32>
    %c127_i32_27 = arith.constant 127 : i32
    %78 = tpu.dynamic_rotate %72 by %c127_i32_27 dim 1 : vector<16x128xf32>, i32 -> vector<16x128xf32>
    %79 = arith.select %47, %72, %78 : vector<16x128xi1>, vector<16x128xf32>
    %c1_i32_28 = arith.constant 1 : i32
    %80 = tpu.dynamic_rotate %72 by %c1_i32_28 dim 0 : vector<16x128xf32>, i32 -> vector<16x128xf32>
    %81 = arith.select %51, %72, %80 : vector<16x128xi1>, vector<16x128xf32>
    %c15_i32_29 = arith.constant 15 : i32
    %82 = tpu.dynamic_rotate %72 by %c15_i32_29 dim 0 : vector<16x128xf32>, i32 -> vector<16x128xf32>
    %83 = arith.select %55, %72, %82 : vector<16x128xi1>, vector<16x128xf32>
    %84 = arith.addf %77, %79 : vector<16x128xf32>
    %85 = arith.addf %81, %83 : vector<16x128xf32>
    %86 = arith.addf %84, %85 : vector<16x128xf32>
    %cst_30 = arith.constant 0.000000e+00 : f32
    %87 = vector.broadcast %cst_30 : f32 to vector<16x128xf32>
    %88 = arith.mulf %87, %72 : vector<16x128xf32>
    %cst_31 = arith.constant 0.243902445 : f32
    %89 = vector.broadcast %cst_31 : f32 to vector<16x128xf32>
    %90 = arith.mulf %89, %86 : vector<16x128xf32>
    %91 = arith.addf %88, %90 : vector<16x128xf32>
    %92 = arith.addf %91, %5 : vector<16x128xf32>
    %c1 = arith.constant 1 : index
    %c0_32 = arith.constant 0 : index
    %c0_33 = arith.constant 0 : index
    %c0_34 = arith.constant 0 : index
    %93 = vector.load %arg3[%c1, %c0_32, %c0_33, %c0_34] : memref<4x1x16x128xf32, #tpu.memory_space<vmem>>, vector<1x1x16x128xf32>
    %94 = vector.shape_cast %93 : vector<1x1x16x128xf32> to vector<16x128xf32>
    %95 = vector.shape_cast %92 : vector<16x128xf32> to vector<1x1x16x128xf32>
    tpu.vector_store %arg3[%c1, %c0_32, %c0_33, %c0_34], %95 {strides = array<i32>} : memref<4x1x16x128xf32, #tpu.memory_space<vmem>>, vector<1x1x16x128xf32>,
    %c1_i32_35 = arith.constant 1 : i32
    %96 = tpu.dynamic_rotate %92 by %c1_i32_35 dim 1 : vector<16x128xf32>, i32 -> vector<16x128xf32>
    %97 = arith.select %43, %92, %96 : vector<16x128xi1>, vector<16x128xf32>
    %c127_i32_36 = arith.constant 127 : i32
    %98 = tpu.dynamic_rotate %92 by %c127_i32_36 dim 1 : vector<16x128xf32>, i32 -> vector<16x128xf32>
    %99 = arith.select %47, %92, %98 : vector<16x128xi1>, vector<16x128xf32>
    %c1_i32_37 = arith.constant 1 : i32
    %100 = tpu.dynamic_rotate %92 by %c1_i32_37 dim 0 : vector<16x128xf32>, i32 -> vector<16x128xf32>
    %101 = arith.select %51, %92, %100 : vector<16x128xi1>, vector<16x128xf32>
    %c15_i32_38 = arith.constant 15 : i32
    %102 = tpu.dynamic_rotate %92 by %c15_i32_38 dim 0 : vector<16x128xf32>, i32 -> vector<16x128xf32>
    %103 = arith.select %55, %92, %102 : vector<16x128xi1>, vector<16x128xf32>
    %104 = arith.addf %97, %99 : vector<16x128xf32>
    %105 = arith.addf %101, %103 : vector<16x128xf32>
    %106 = arith.addf %104, %105 : vector<16x128xf32>
    %cst_39 = arith.constant 0.000000e+00 : f32
    %107 = vector.broadcast %cst_39 : f32 to vector<16x128xf32>
    %108 = arith.mulf %107, %92 : vector<16x128xf32>
    %cst_40 = arith.constant 0.243902445 : f32
    %109 = vector.broadcast %cst_40 : f32 to vector<16x128xf32>
    %110 = arith.mulf %109, %106 : vector<16x128xf32>
    %111 = arith.addf %108, %110 : vector<16x128xf32>
    %112 = arith.addf %111, %5 : vector<16x128xf32>
    %c2 = arith.constant 2 : index
    %c0_41 = arith.constant 0 : index
    %c0_42 = arith.constant 0 : index
    %c0_43 = arith.constant 0 : index
    %113 = vector.load %arg3[%c2, %c0_41, %c0_42, %c0_43] : memref<4x1x16x128xf32, #tpu.memory_space<vmem>>, vector<1x1x16x128xf32>
    %114 = vector.shape_cast %113 : vector<1x1x16x128xf32> to vector<16x128xf32>
    %115 = vector.shape_cast %112 : vector<16x128xf32> to vector<1x1x16x128xf32>
    tpu.vector_store %arg3[%c2, %c0_41, %c0_42, %c0_43], %115 {strides = array<i32>} : memref<4x1x16x128xf32, #tpu.memory_space<vmem>>, vector<1x1x16x128xf32>,
    %c1_i32_44 = arith.constant 1 : i32
    %116 = tpu.dynamic_rotate %112 by %c1_i32_44 dim 1 : vector<16x128xf32>, i32 -> vector<16x128xf32>
    %117 = arith.select %43, %112, %116 : vector<16x128xi1>, vector<16x128xf32>
    %c127_i32_45 = arith.constant 127 : i32
    %118 = tpu.dynamic_rotate %112 by %c127_i32_45 dim 1 : vector<16x128xf32>, i32 -> vector<16x128xf32>
    %119 = arith.select %47, %112, %118 : vector<16x128xi1>, vector<16x128xf32>
    %c1_i32_46 = arith.constant 1 : i32
    %120 = tpu.dynamic_rotate %112 by %c1_i32_46 dim 0 : vector<16x128xf32>, i32 -> vector<16x128xf32>
    %121 = arith.select %51, %112, %120 : vector<16x128xi1>, vector<16x128xf32>
    %c15_i32_47 = arith.constant 15 : i32
    %122 = tpu.dynamic_rotate %112 by %c15_i32_47 dim 0 : vector<16x128xf32>, i32 -> vector<16x128xf32>
    %123 = arith.select %55, %112, %122 : vector<16x128xi1>, vector<16x128xf32>
    %124 = arith.addf %117, %119 : vector<16x128xf32>
    %125 = arith.addf %121, %123 : vector<16x128xf32>
    %126 = arith.addf %124, %125 : vector<16x128xf32>
    %cst_48 = arith.constant 0.000000e+00 : f32
    %127 = vector.broadcast %cst_48 : f32 to vector<16x128xf32>
    %128 = arith.mulf %127, %112 : vector<16x128xf32>
    %cst_49 = arith.constant 0.243902445 : f32
    %129 = vector.broadcast %cst_49 : f32 to vector<16x128xf32>
    %130 = arith.mulf %129, %126 : vector<16x128xf32>
    %131 = arith.addf %128, %130 : vector<16x128xf32>
    %132 = arith.addf %131, %5 : vector<16x128xf32>
    %c3 = arith.constant 3 : index
    %c0_50 = arith.constant 0 : index
    %c0_51 = arith.constant 0 : index
    %c0_52 = arith.constant 0 : index
    %133 = vector.load %arg3[%c3, %c0_50, %c0_51, %c0_52] : memref<4x1x16x128xf32, #tpu.memory_space<vmem>>, vector<1x1x16x128xf32>
    %134 = vector.shape_cast %133 : vector<1x1x16x128xf32> to vector<16x128xf32>
    %135 = vector.shape_cast %132 : vector<16x128xf32> to vector<1x1x16x128xf32>
    tpu.vector_store %arg3[%c3, %c0_50, %c0_51, %c0_52], %135 {strides = array<i32>} : memref<4x1x16x128xf32, #tpu.memory_space<vmem>>, vector<1x1x16x128xf32>,
    return
  }
  func.func @transform_0(%arg0: i32) -> (i32, i32, i32) {
    %c0_i32 = arith.constant 0 : i32
    %c0_i32_0 = arith.constant 0 : i32
    %c0_i32_1 = arith.constant 0 : i32
    return %arg0, %c0_i32, %c0_i32_0 : i32, i32, i32
  }
  func.func @transform_1(%arg0: i32) -> (i32, i32, i32) {
    %c0_i32 = arith.constant 0 : i32
    %c0_i32_0 = arith.constant 0 : i32
    %c0_i32_1 = arith.constant 0 : i32
    return %arg0, %c0_i32, %c0_i32_0 : i32, i32, i32
  }
  func.func @transform_2(%arg0: i32) -> (i32, i32, i32, i32) {
    %c0_i32 = arith.constant 0 : i32
    %c0_i32_0 = arith.constant 0 : i32
    %c0_i32_1 = arith.constant 0 : i32
    %c0_i32_2 = arith.constant 0 : i32
    return %c0_i32, %arg0, %c0_i32_0, %c0_i32_1 : i32, i32, i32, i32
  }
}

</mosaic_0001>

<bundles_post_ra>
// kernel: tpu_custom_call.1
= control target key start
LH: loop header
LB: loop body
LE: loop exit
PB: predicated region body
PF: predicated region fallthrough
CT: control target
= control target key end

     0   :  { %7 = vsyncpa [#allocation3], 0  ;;  %s549_s0 = inlined_call_operand.hbm [shape: f32[1,16,128], index: 0, kind: input, shape index: {}]   ;;  %s550_s1 = inlined_call_operand.hbm [shape: f32[1,16,128], index: 1, kind: input, shape index: {}]   ;;  %s551_s2 = inlined_call_operand.hbm [shape: f32[4,1,16,128], index: 2, kind: output, shape index: {}]  }
   0x1   :  { %8 = vsyncpa [#allocation6], 0 }
   0x2   :  { %9 = vsyncpa [#allocation4], 0  ;;  %s14_s11 = sshll.u32 %s549_s0, 4  ;;  %s379_s12 = smov [#allocation2]   ;;  %s15_s11 = int_to_ptr.hbm [resolvable:$true] %s14_s11 }
   0x3   :  { %s16_s13 = sshll.u32 %s379_s12, 4  ;;  %s27_s16 = sshll.u32 %s550_s1, 4  ;;  %s17_s13 = int_to_ptr.vmem [resolvable:$true] %s16_s13  ;;  %s28_s16 = int_to_ptr.hbm [resolvable:$true] %s27_s16 }
   0x4   :  { %s380_s17 = smov 128   ;;  %s381_s18 = smov 8  }
   0x5   :  { %22 = dma.hbm_to_vmem [thread:$0]  %s15_s11, 256, %s17_s13, [#allocation3], %s380_s17, %s380_s17, %s381_s18  }
   0x6   :  { %s382_s19 = smov [#allocation5]  }
   0x7   :  { %s29_s20 = sshll.u32 %s382_s19, 4  ;;  %s30_s20 = int_to_ptr.vmem [resolvable:$true] %s29_s20 }
   0x8   :  { %35 = dma.hbm_to_vmem [thread:$0]  %s28_s16, 256, %s30_s20, [#allocation6], %s380_s17, %s380_s17, %s381_s18  }
   0x9   :  { %373 = dma.done.wait [#allocation3], 256  }
   0xa   :  { %374 = vsyncadd [#allocation3], 4294967040 }
   0xb   :  { %375 = dma.done.wait [#allocation6], 256  }
   0xc   :  { %376 = vsyncadd [#allocation6], 4294967040  ;;  %v44_v0 = vld [vmem:[#allocation2] sm:$0xff]  ;;  %s383_s0 = smov 127   ;;  %s384_s1 = smov 1   ;;  %v45_v1 = vld [vmem:[#allocation2 + $0x8] sm:$0xff]  ;;  %v50_v2 = vlaneseq }
   0xd   :  { %115 = vrot.lane.b32.xlu1 %v44_v0, %s383_s0  ;;  %109 = vrot.lane.b32.xlu0 %v44_v0, %s384_s1  ;;  %v122_v6 = vrot.slane %v45_v1, 7  ;;  %v121_v7 = vrot.slane %v44_v0, 7  ;;  %v129_v9 = vrot.slane %v45_v1, 1  ;;  %v128_v10 = vrot.slane %v44_v0, 1  ;;  %v46_v27 = vld [vmem:[#allocation5] sm:$0xff]  ;;  %v47_v42 = vld [vmem:[#allocation5 + $0x8] sm:$0xff] }
   0xe   :  { %v417_v3 = vshrl.u32 %v50_v2, 7  ;;  %v51_v4 = vand.u32 127, %v50_v2  ;;  %v141_v29 = vmul.f32 0.0, %v44_v0  ;;  %v455_v32 = vmul.f32 0.024390243, %v46_v27  ;;  %s385_s21 = smov [#allocation7]  }
   0xf   :  { %v142_v43 = vmul.f32 0.0, %v45_v1  ;;  %v464_v45 = vmul.f32 0.024390243, %v47_v42  ;;  %s278_s22 = sshll.u32 %s385_s21, 4  ;;  %s280_s25 = sshll.u32 %s551_s2, 4  ;;  %s279_s22 = int_to_ptr.vmem [resolvable:$true] %s278_s22  ;;  %s281_s25 = int_to_ptr.hbm [resolvable:$true] %s280_s25 }
  0x10   :  { %v71_v5 = vand.u32 15, %v417_v3  ;;  %vm123_vm0 = vcmp.lt.s32.totalorder %v417_v3, 1  ;;  %v56_v8 = vand.u32 15, %v51_v4  ;;  %vm130_vm2 = vcmp.lt.s32.totalorder %v417_v3, 7 }
  0x11   :  { %v125_v12 = vsel %vm123_vm0, %v122_v6, %v121_v7  ;;  %v66_v13 = vadd.s32 8, %v417_v3  ;;  %v131_v15 = vsel %vm130_vm2, %v128_v10, %v129_v9  ;;  %v132_v26 = vsel %vm130_vm2, %v129_v9, %v128_v10 }
  0x12   :  { %vm421_vm1 = vcmp.eq.s32.totalorder %v71_v5, 0  ;;  %vm433_vm3 = vcmp.eq.s32.totalorder %v56_v8, 15  ;;  %vm437_vm4 = vcmp.eq.s32.totalorder %v56_v8, 0  ;;  %v124_v30 = vsel %vm123_vm0, %v121_v7, %v122_v6 }
  0x13   :  { %v126_v14 = vsel %vm421_vm1, %v44_v0, %v125_v12  ;;  %v78_v18 = vand.u32 15, %v66_v13 }
  0x14   :  { %v137_v21 = vadd.f32 %v131_v15, %v126_v14 }
  0x15   :  { %117 = vrot.lane.b32.xlu1 %v45_v1, %s383_s0  ;;  %111 = vrot.lane.b32.xlu0 %v45_v1, %s384_s1  ;;  %vm445_vm5 = vcmp.eq.s32.totalorder %v78_v18, 15 }
  0x16   :  { %v134_v31 = vsel %vm445_vm5, %v45_v1, %v132_v26 }
  0x17   :  { %v138_v37 = vadd.f32 %v134_v31, %v124_v30 }
  0x7f   :  { %v116_v19 = vpop.permute.xlu1 %115  ;;  %v110_v20 = vpop.permute.xlu0 %109 }
  0x80   :  { %v119_v22 = vsel %vm433_vm3, %v44_v0, %v116_v19  ;;  %v113_v23 = vsel %vm437_vm4, %v44_v0, %v110_v20 }
  0x81   :  { %v135_v24 = vadd.f32 %v119_v22, %v113_v23 }
  0x83   :  { %v139_v28 = vadd.f32 %v137_v21, %v135_v24 }
  0x85   :  { %v143_v33 = vmul.f32 0.24390244, %v139_v28 }
  0x87   :  { %v145_v34 = vadd.f32 %v143_v33, %v141_v29  ;;  %v118_v35 = vpop.permute.xlu1 %117  ;;  %v112_v36 = vpop.permute.xlu0 %111 }
  0x88   :  { %v120_v38 = vsel %vm433_vm3, %v45_v1, %v118_v35  ;;  %v114_v39 = vsel %vm437_vm4, %v45_v1, %v112_v36 }
  0x89   :  { %v147_v40 = vadd.f32 %v145_v34, %v455_v32  ;;  %v136_v41 = vadd.f32 %v120_v38, %v114_v39 }
  0x8b   :  { %149 = vst [vmem:[#allocation7] sm:$0xff] %v147_v40  ;;  %v140_v44 = vadd.f32 %v138_v37, %v136_v41  ;;  %157 = vrot.lane.b32.xlu0 %v147_v40, %s383_s0  ;;  %151 = vrot.lane.b32.xlu2 %v147_v40, %s384_s1  ;;  %v163_v50 = vrot.slane %v147_v40, 7  ;;  %v169_v54 = vrot.slane %v147_v40, 1  ;;  %v181_v1 = vmul.f32 0.0, %v147_v40 }
  0x8d   :  { %v144_v46 = vmul.f32 0.24390244, %v140_v44 }
  0x8f   :  { %v146_v47 = vadd.f32 %v144_v46, %v142_v43 }
  0x91   :  { %v148_v48 = vadd.f32 %v146_v47, %v464_v45 }
  0x93   :  { %150 = vst [vmem:[#allocation7 + $0x8] sm:$0xff] %v148_v48  ;;  %159 = vrot.lane.b32.xlu1 %v148_v48, %s383_s0  ;;  %153 = vrot.lane.b32.xlu2 %v148_v48, %s384_s1  ;;  %v164_v49 = vrot.slane %v148_v48, 7  ;;  %v170_v51 = vrot.slane %v148_v48, 1  ;;  %v182_v15 = vmul.f32 0.0, %v148_v48 }
  0x95   :  { %v166_v53 = vsel %vm123_vm0, %v164_v49, %v163_v50  ;;  %v171_v56 = vsel %vm130_vm2, %v169_v54, %v170_v51  ;;  %v172_v63 = vsel %vm130_vm2, %v170_v51, %v169_v54  ;;  %v165_v4 = vsel %vm123_vm0, %v163_v50, %v164_v49 }
  0x96   :  { %v167_v55 = vsel %vm421_vm1, %v147_v40, %v166_v53  ;;  %v174_v5 = vsel %vm445_vm5, %v148_v48, %v172_v63 }
  0x97   :  { %v177_v61 = vadd.f32 %v171_v56, %v167_v55  ;;  %v178_v13 = vadd.f32 %v174_v5, %v165_v4 }
  0xe5   :  { %v152_v52 = vpop.permute.xlu2 %151 }
  0xe6   :  { %v155_v58 = vsel %vm437_vm4, %v147_v40, %v152_v52 }
  0xed   :  { %v154_v0 = vpop.permute.xlu2 %153 }
  0xee   :  { %v156_v8 = vsel %vm437_vm4, %v148_v48, %v154_v0 }
  0xfd   :  { %v158_v57 = vpop.permute.xlu0 %157 }
  0xfe   :  { %v161_v59 = vsel %vm433_vm3, %v147_v40, %v158_v57 }
  0xff   :  { %v175_v60 = vadd.f32 %v161_v59, %v155_v58 }
 0x101   :  { %v179_v62 = vadd.f32 %v177_v61, %v175_v60 }
 0x103   :  { %v183_v2 = vmul.f32 0.24390244, %v179_v62 }
 0x105   :  { %v185_v6 = vadd.f32 %v183_v2, %v181_v1  ;;  %v160_v7 = vpop.permute.xlu1 %159 }
 0x106   :  { %v162_v9 = vsel %vm433_vm3, %v148_v48, %v160_v7 }
 0x107   :  { %v187_v10 = vadd.f32 %v185_v6, %v455_v32  ;;  %v176_v12 = vadd.f32 %v162_v9, %v156_v8 }
 0x109   :  { %190 = vst [vmem:[#allocation7 + $0x10] sm:$0xff] %v187_v10  ;;  %v180_v14 = vadd.f32 %v178_v13, %v176_v12  ;;  %198 = vrot.lane.b32.xlu1 %v187_v10, %s383_s0  ;;  %192 = vrot.lane.b32.xlu2 %v187_v10, %s384_s1  ;;  %v204_v22 = vrot.slane %v187_v10, 7  ;;  %v210_v27 = vrot.slane %v187_v10, 1  ;;  %v222_v39 = vmul.f32 0.0, %v187_v10 }
 0x10b   :  { %v184_v18 = vmul.f32 0.24390244, %v180_v14 }
 0x10d   :  { %v186_v19 = vadd.f32 %v184_v18, %v182_v15 }
 0x10f   :  { %v188_v20 = vadd.f32 %v186_v19, %v464_v45 }
 0x111   :  { %191 = vst [vmem:[#allocation7 + $0x18] sm:$0xff] %v188_v20  ;;  %200 = vrot.lane.b32.xlu2 %v188_v20, %s383_s0  ;;  %194 = vrot.lane.b32.xlu0 %v188_v20, %s384_s1  ;;  %v205_v21 = vrot.slane %v188_v20, 7  ;;  %v211_v23 = vrot.slane %v188_v20, 1  ;;  %v223_v52 = vmul.f32 0.0, %v188_v20 }
 0x113   :  { %v207_v26 = vsel %vm123_vm0, %v205_v21, %v204_v22  ;;  %v212_v29 = vsel %vm130_vm2, %v210_v27, %v211_v23  ;;  %v213_v37 = vsel %vm130_vm2, %v211_v23, %v210_v27  ;;  %v206_v41 = vsel %vm123_vm0, %v204_v22, %v205_v21 }
 0x114   :  { %v208_v28 = vsel %vm421_vm1, %v187_v10, %v207_v26  ;;  %v215_v42 = vsel %vm445_vm5, %v188_v20, %v213_v37 }
 0x115   :  { %v218_v35 = vadd.f32 %v212_v29, %v208_v28  ;;  %v219_v50 = vadd.f32 %v215_v42, %v206_v41 }
 0x163   :  { %v193_v24 = vpop.permute.xlu2 %192 }
 0x164   :  { %v196_v31 = vsel %vm437_vm4, %v187_v10, %v193_v24 }
 0x16b   :  { %v201_v38 = vpop.permute.xlu2 %200 }
 0x16c   :  { %v203_v46 = vsel %vm433_vm3, %v188_v20, %v201_v38 }
 0x17b   :  { %v199_v30 = vpop.permute.xlu1 %198 }
 0x17c   :  { %v202_v33 = vsel %vm433_vm3, %v187_v10, %v199_v30 }
 0x17d   :  { %v216_v34 = vadd.f32 %v202_v33, %v196_v31 }
 0x17f   :  { %v220_v36 = vadd.f32 %v218_v35, %v216_v34 }
 0x181   :  { %v224_v40 = vmul.f32 0.24390244, %v220_v36 }
 0x183   :  { %v226_v43 = vadd.f32 %v224_v40, %v222_v39  ;;  %v195_v44 = vpop.permute.xlu0 %194 }
 0x184   :  { %v197_v47 = vsel %vm437_vm4, %v188_v20, %v195_v44 }
 0x185   :  { %v228_v48 = vadd.f32 %v226_v43, %v455_v32  ;;  %v217_v49 = vadd.f32 %v203_v46, %v197_v47 }
 0x187   :  { %231 = vst [vmem:[#allocation7 + $0x20] sm:$0xff] %v228_v48  ;;  %v221_v51 = vadd.f32 %v219_v50, %v217_v49  ;;  %239 = vrot.lane.b32.xlu2 %v228_v48, %s383_s0  ;;  %233 = vrot.lane.b32.xlu0 %v228_v48, %s384_s1  ;;  %v245_v57 = vrot.slane %v228_v48, 7  ;;  %v251_v60 = vrot.slane %v228_v48, 1  ;;  %v263_v8 = vmul.f32 0.0, %v228_v48 }
 0x189   :  { %v225_v53 = vmul.f32 0.24390244, %v221_v51 }
 0x18b   :  { %v227_v54 = vadd.f32 %v225_v53, %v223_v52 }
 0x18d   :  { %v229_v55 = vadd.f32 %v227_v54, %v464_v45 }
 0x18f   :  { %232 = vst [vmem:[#allocation7 + $0x28] sm:$0xff] %v229_v55  ;;  %241 = vrot.lane.b32.xlu0 %v229_v55, %s383_s0  ;;  %235 = vrot.lane.b32.xlu1 %v229_v55, %s384_s1  ;;  %v246_v56 = vrot.slane %v229_v55, 7  ;;  %v252_v58 = vrot.slane %v229_v55, 1  ;;  %v264_v3 = vmul.f32 0.0, %v229_v55 }
 0x191   :  { %v248_v59 = vsel %vm123_vm0, %v246_v56, %v245_v57  ;;  %v253_v63 = vsel %vm130_vm2, %v251_v60, %v252_v58  ;;  %v254_v7 = vsel %vm130_vm2, %v252_v58, %v251_v60  ;;  %v247_v11 = vsel %vm123_vm0, %v245_v57, %v246_v56 }
 0x192   :  { %v249_v62 = vsel %vm421_vm1, %v228_v48, %v248_v59  ;;  %v256_v10 = vsel %vm445_vm5, %v229_v55, %v254_v7 }
 0x193   :  { %v259_v5 = vadd.f32 %v253_v63, %v249_v62  ;;  %v260_v21 = vadd.f32 %v256_v10, %v247_v11 }
 0x1e1   :  { %v240_v61 = vpop.permute.xlu2 %239 }
 0x1e2   :  { %v243_v1 = vsel %vm433_vm3, %v228_v48, %v240_v61 }
 0x1f9   :  { %v234_v0 = vpop.permute.xlu0 %233 }
 0x1fa   :  { %v237_v2 = vsel %vm437_vm4, %v228_v48, %v234_v0 }
 0x1fb   :  { %v257_v4 = vadd.f32 %v243_v1, %v237_v2 }
 0x1fd   :  { %v261_v6 = vadd.f32 %v259_v5, %v257_v4 }
 0x1ff   :  { %v265_v9 = vmul.f32 0.24390244, %v261_v6 }
 0x201   :  { %v267_v12 = vadd.f32 %v265_v9, %v263_v8  ;;  %v242_v13 = vpop.permute.xlu0 %241  ;;  %v236_v14 = vpop.permute.xlu1 %235 }
 0x202   :  { %v244_v15 = vsel %vm433_vm3, %v229_v55, %v242_v13  ;;  %v238_v18 = vsel %vm437_vm4, %v229_v55, %v236_v14 }
 0x203   :  { %v269_v19 = vadd.f32 %v267_v12, %v455_v32  ;;  %v258_v20 = vadd.f32 %v244_v15, %v238_v18 }
 0x205   :  { %272 = vst [vmem:[#allocation7 + $0x30] sm:$0xff] %v269_v19  ;;  %v262_v22 = vadd.f32 %v260_v21, %v258_v20 }
 0x207   :  { %v266_v23 = vmul.f32 0.24390244, %v262_v22 }
 0x209   :  { %v268_v25 = vadd.f32 %v266_v23, %v264_v3 }
 0x20b   :  { %v270_v16 = vadd.f32 %v268_v25, %v464_v45 }
 0x20d   :  { %273 = vst [vmem:[#allocation7 + $0x38] sm:$0xff] %v270_v16 }
 0x20e   :  { %286 = dma.vmem_to_hbm [thread:$0]  %s279_s22, 1024, %s281_s25, [#allocation4], %s380_s17, %s380_s17, %s381_s18  }
 0x20f   :  { %377 = dma.done.wait [#allocation4], 1024  }
 0x210   :  { %378 = vsyncadd [#allocation4], 4294966272 }
 0x211   :  { %291 = vsyncpa [#allocation3], 1 }
 0x212   :  { %292 = vsyncpa [#allocation6], 1 }
 0x213   :  { %293 = vsyncpa [#allocation4], 1 }

</bundles_post_ra>
